<compile_context>
chip_gen: v5e
topology: v5e:2x2
jax: 0.10.0
libtpu: 0.0.40
codegen_flags: <defaults>
</compile_context>

<pallas_src>
import functools

import jax
import jax.numpy as jnp
from jax import lax
from jax.experimental import pallas as pl
from jax.experimental.pallas import tpu as pltpu

EPS = 1e-5          # nn.InstanceNorm2d default
LEAKY_SLOPE = 0.01  # nn.LeakyReLU default


def _pad_offset(W):
    # lane offset where the image starts inside the zero-margined flat buffer;
    # must be >= W + 1 (largest |flat shift| of a 3x3 tap); keep it 128-aligned.
    return ((W + 1 + 127) // 128) * 128


def _conv3x3_instance_norm(act, xe_ref, pat_ref, w2d, bias, m_left, m_right, *, W):
    """act: (C, H*W) activation, row-major flattened spatial on the lane axis.

    Computes 3x3 conv (padding=1) + bias + InstanceNorm2d (biased var, eps=1e-5)
    as a single im2col MXU matmul. Returns (Cout, H*W) float32.
    """
    C, HW = act.shape
    OFF = _pad_offset(W)

    # Place activations in a zero-margined extended buffer so that every shifted
    # stencil tap is an in-bounds static lane-slice; vertical out-of-image taps
    # read the zero margins (== the conv zero padding).
    xe_ref[...] = jnp.zeros_like(xe_ref)
    xe_ref[:, OFF:OFF + HW] = act

    # im2col: tap (dy, dx) of the 3x3 stencil is a flat shift by (dy-1)*W + (dx-1).
    # Horizontal cross-row bleed is removed with the left/right column masks.
    for dy in range(3):
        for dx in range(3):
            t = dy * 3 + dx
            s = (dy - 1) * W + (dx - 1)
            tap = xe_ref[:, OFF + s:OFF + s + HW]              # (C, HW)
            if dx == 0:
                tap = tap * m_left                             # source col-1 invalid at col==0
            elif dx == 2:
                tap = tap * m_right                            # source col+1 invalid at col==W-1
            pat_ref[t * C:(t + 1) * C, :] = tap

    # Single MXU matmul per conv: (Cout, 9*C) @ (9*C, H*W), lane-dense result.
    acc = jnp.dot(w2d, pat_ref[...], preferred_element_type=jnp.float32) + bias

    # One-pass InstanceNorm2d statistics over the spatial (lane) axis.
    mean = jnp.mean(acc, axis=1, keepdims=True)
    mean_sq = jnp.mean(acc * acc, axis=1, keepdims=True)
    var = jnp.maximum(mean_sq - mean * mean, 0.0)
    return (acc - mean) * lax.rsqrt(var + EPS)


def fused_inconv_kernel(x_ref, mask_ref, w1_ref, b1_ref, w2_ref, b2_ref,
                        scale_ref, shift_ref, o_ref,
                        xe1_ref, pat1_ref, xe2_ref, pat2_ref, *, W):
    m_left = mask_ref[0:1, :]                    # zero where col == 0
    m_right = mask_ref[1:2, :]                   # zero where col == W-1

    # ---- stage 1: one_conv = Conv3x3 -> InstanceNorm2d -> ReLU ----
    y1 = _conv3x3_instance_norm(x_ref[0], xe1_ref, pat1_ref,
                                w1_ref[...], b1_ref[...], m_left, m_right, W=W)
    y1 = jnp.maximum(y1, 0.0)

    # ---- stage 2: one_conv_adain = Conv3x3 -> InstanceNorm2d -> AdaIN -> LeakyReLU ----
    y2 = _conv3x3_instance_norm(y1, xe2_ref, pat2_ref,
                                w2_ref[...], b2_ref[...], m_left, m_right, W=W)

    # AdaIN FC + alpha blend pre-folded in the wrapper:
    #   scale = alpha * relu(fc_var) + (1 - alpha),  shift = alpha * fc_mean
    y = scale_ref[0] * y2 + shift_ref[0]
    o_ref[0] = jnp.where(y >= 0.0, y, LEAKY_SLOPE * y).astype(o_ref.dtype)


def inconv_forward(x_nchw, shared_code, alpha, params):
    """x_nchw: (N, Cin, H, W); shared_code: (N, 64); alpha: scalar."""
    x = x_nchw.astype(jnp.float32)
    N, Cin, H, W = x.shape
    Cout = params["w1"].shape[-1]
    HW = H * W
    OFF = _pad_offset(W)

    # NCHW -> (N, Cin, H*W): metadata-only reshape (no HBM transpose / pad).
    x_flat = x.reshape(N, Cin, HW)

    # Conv weights HWIO -> (Cout, 9*Cin), K ordered (dy, dx, cin) to match im2col.
    w1 = jnp.transpose(params["w1"], (3, 0, 1, 2)).reshape(Cout, 9 * Cin).astype(jnp.float32)
    w2 = jnp.transpose(params["w2"], (3, 0, 1, 2)).reshape(Cout, 9 * Cout).astype(jnp.float32)
    b1 = params["b1"].reshape(Cout, 1).astype(jnp.float32)
    b2 = params["b2"].reshape(Cout, 1).astype(jnp.float32)

    # AdaIN FC layers hoisted out of the kernel; alpha blend folded into scale/shift.
    sc = shared_code.astype(jnp.float32)
    fc_mean = sc @ params["wm"] + params["bm"]
    fc_var = jnp.maximum(sc @ params["wv"] + params["bv"], 0.0)
    alpha_f = jnp.float32(alpha)
    scale = (alpha_f * fc_var + (1.0 - alpha_f)).reshape(N, Cout, 1)
    shift = (alpha_f * fc_mean).reshape(N, Cout, 1)

    # Column masks that kill row wrap-around of the horizontal stencil taps.
    col = jnp.arange(HW, dtype=jnp.int32) % W
    masks = jnp.stack([(col != 0).astype(jnp.float32),
                       (col != W - 1).astype(jnp.float32)])    # (2, HW)

    kernel = functools.partial(fused_inconv_kernel, W=W)
    out_flat = pl.pallas_call(
        kernel,
        out_shape=jax.ShapeDtypeStruct((N, Cout, HW), jnp.float32),
        grid=(N,),
        in_specs=[
            pl.BlockSpec((1, Cin, HW), lambda n: (n, 0, 0)),       # input image (flat)
            pl.BlockSpec((2, HW), lambda n: (0, 0)),               # column masks
            pl.BlockSpec((Cout, 9 * Cin), lambda n: (0, 0)),       # conv1 weight (im2col)
            pl.BlockSpec((Cout, 1), lambda n: (0, 0)),             # conv1 bias
            pl.BlockSpec((Cout, 9 * Cout), lambda n: (0, 0)),      # conv2 weight (im2col)
            pl.BlockSpec((Cout, 1), lambda n: (0, 0)),             # conv2 bias
            pl.BlockSpec((1, Cout, 1), lambda n: (n, 0, 0)),       # AdaIN scale (alpha folded)
            pl.BlockSpec((1, Cout, 1), lambda n: (n, 0, 0)),       # AdaIN shift (alpha folded)
        ],
        out_specs=pl.BlockSpec((1, Cout, HW), lambda n: (n, 0, 0)),
        scratch_shapes=[
            pltpu.VMEM((Cin, HW + 2 * OFF), jnp.float32),          # stage-1 padded flat buffer
            pltpu.VMEM((9 * Cin, HW), jnp.float32),                # stage-1 im2col patches
            pltpu.VMEM((Cout, HW + 2 * OFF), jnp.float32),         # stage-2 padded flat buffer
            pltpu.VMEM((9 * Cout, HW), jnp.float32),               # stage-2 im2col patches
        ],
        compiler_params=pltpu.CompilerParams(
            dimension_semantics=("parallel",)),
    )(x_flat, masks, w1, b1, w2, b2, scale, shift)

    # (N, Cout, H*W) -> (N, Cout, H, W): metadata-only reshape, already NCHW.
    return out_flat.reshape(N, Cout, H, W)


# ----------------- pure-JAX reference (PyTorch semantics) -----------------
def inconv_reference(x, shared_code, alpha, params):
    def conv3x3(inp, w_hwio, b):
        w_oihw = jnp.transpose(w_hwio, (3, 2, 0, 1))
        out = lax.conv_general_dilated(
            inp, w_oihw, window_strides=(1, 1), padding=((1, 1), (1, 1)),
            dimension_numbers=("NCHW", "OIHW", "NCHW"))
        return out + b[None, :, None, None]

    def inorm(z):
        m = z.mean(axis=(2, 3), keepdims=True)
        v = ((z - m) ** 2).mean(axis=(2, 3), keepdims=True)
        return (z - m) / jnp.sqrt(v + EPS)

    y = jnp.maximum(inorm(conv3x3(x, params["w1"], params["b1"])), 0.0)
    z = inorm(conv3x3(y, params["w2"], params["b2"]))
    fc_mean = shared_code @ params["wm"] + params["bm"]
    fc_var = jnp.maximum(shared_code @ params["wv"] + params["bv"], 0.0)
    z_out = fc_var[:, :, None, None] * z + fc_mean[:, :, None, None]
    z_out = z_out * alpha + z * (1.0 - alpha)
    return jnp.where(z_out >= 0, z_out, LEAKY_SLOPE * z_out)


if __name__ == "__main__":
    key = jax.random.PRNGKey(0)
    in_ch, out_ch = 4, 8
    N, H, W = 2, 16, 16
    ks = jax.random.split(key, 10)

    # Deterministic synthetic parameters (conv weights stored HWIO; linears stored (in,out)).
    params = {
        "w1": jax.random.normal(ks[0], (3, 3, in_ch, out_ch), jnp.float32) * 0.1,
        "b1": jax.random.normal(ks[1], (out_ch,), jnp.float32) * 0.1,
        "w2": jax.random.normal(ks[2], (3, 3, out_ch, out_ch), jnp.float32) * 0.1,
        "b2": jax.random.normal(ks[3], (out_ch,), jnp.float32) * 0.1,
        "wm": jax.random.normal(ks[4], (64, out_ch), jnp.float32) * 0.1,
        "bm": jax.random.normal(ks[5], (out_ch,), jnp.float32) * 0.1,
        "wv": jax.random.normal(ks[6], (64, out_ch), jnp.float32) * 0.1,
        "bv": jax.random.normal(ks[7], (out_ch,), jnp.float32) * 0.1,
    }
    x = jax.random.normal(ks[8], (N, in_ch, H, W), jnp.float32)
    shared_code = jax.random.normal(ks[9], (N, 64), jnp.float32)
    alpha = 0.7

    fwd = jax.jit(inconv_forward)
    out = jax.block_until_ready(fwd(x, shared_code, alpha, params))
    ref = inconv_reference(x, shared_code, alpha, params)

    assert out.shape == (N, out_ch, H, W), out.shape
    max_err = float(jnp.max(jnp.abs(out - ref)))
    assert max_err < 1e-3, f"mismatch vs reference, max_err={max_err}"
    print("KERNEL_OK")
</pallas_src>

<mosaic_0001>
module attributes {stable_mosaic.version = 11 : i64} {
  func.func @fused_inconv_kernel(%arg0: i32, %arg1: memref<1x4x256xf32, #tpu.memory_space<vmem>>, %arg2: memref<2x256xf32, #tpu.memory_space<vmem>>, %arg3: memref<8x36xf32, #tpu.memory_space<vmem>>, %arg4: memref<8x1xf32, #tpu.memory_space<vmem>>, %arg5: memref<8x72xf32, #tpu.memory_space<vmem>>, %arg6: memref<8x1xf32, #tpu.memory_space<vmem>>, %arg7: memref<1x8x1xf32, #tpu.memory_space<vmem>>, %arg8: memref<1x8x1xf32, #tpu.memory_space<vmem>>, %arg9: memref<1x8x256xf32, #tpu.memory_space<vmem>>, %arg10: memref<4x512xf32, #tpu.memory_space<vmem>>, %arg11: memref<36x256xf32, #tpu.memory_space<vmem>>, %arg12: memref<8x512xf32, #tpu.memory_space<vmem>>, %arg13: memref<72x256xf32, #tpu.memory_space<vmem>>) attributes {dimension_semantics = [#tpu.dimension_semantics<parallel>], iteration_bounds = array<i64: 2>, scalar_prefetch = 0 : i64, scratch_operands = 4 : i64, tpu.core_type = #tpu.core_type<tc>, window_params = [{transform_indices = @transform_0, window_bounds = array<i64: 1, 4, 256>}, {pipeline_mode = #tpu.pipeline_mode<synchronous>, transform_indices = @transform_1, window_bounds = array<i64: 2, 256>}, {pipeline_mode = #tpu.pipeline_mode<synchronous>, transform_indices = @transform_2, window_bounds = array<i64: 8, 36>}, {pipeline_mode = #tpu.pipeline_mode<synchronous>, transform_indices = @transform_3, window_bounds = array<i64: 8, 1>}, {pipeline_mode = #tpu.pipeline_mode<synchronous>, transform_indices = @transform_4, window_bounds = array<i64: 8, 72>}, {pipeline_mode = #tpu.pipeline_mode<synchronous>, transform_indices = @transform_5, window_bounds = array<i64: 8, 1>}, {transform_indices = @transform_6, window_bounds = array<i64: 1, 8, 1>}, {transform_indices = @transform_7, window_bounds = array<i64: 1, 8, 1>}, {transform_indices = @transform_8, window_bounds = array<i64: 1, 8, 256>}]} {
    %c0 = arith.constant 0 : index
    %c0_0 = arith.constant 0 : index
    %0 = vector.load %arg2[%c0, %c0_0] : memref<2x256xf32, #tpu.memory_space<vmem>>, vector<1x256xf32>
    %c1 = arith.constant 1 : index
    %c0_1 = arith.constant 0 : index
    %1 = vector.load %arg2[%c1, %c0_1] : memref<2x256xf32, #tpu.memory_space<vmem>>, vector<1x256xf32>
    %c0_2 = arith.constant 0 : index
    %c0_3 = arith.constant 0 : index
    %c0_4 = arith.constant 0 : index
    %2 = vector.load %arg1[%c0_2, %c0_3, %c0_4] : memref<1x4x256xf32, #tpu.memory_space<vmem>>, vector<1x4x256xf32>
    %3 = vector.shape_cast %2 : vector<1x4x256xf32> to vector<4x256xf32>
    %c0_5 = arith.constant 0 : index
    %c0_6 = arith.constant 0 : index
    %4 = vector.load %arg3[%c0_5, %c0_6] : memref<8x36xf32, #tpu.memory_space<vmem>>, vector<8x36xf32>
    %c0_7 = arith.constant 0 : index
    %c0_8 = arith.constant 0 : index
    %5 = vector.load %arg4[%c0_7, %c0_8] : memref<8x1xf32, #tpu.memory_space<vmem>>, vector<8x1xf32>
    %cst = arith.constant 0.000000e+00 : f32
    %6 = vector.broadcast %cst : f32 to vector<4x512xf32>
    %c0_9 = arith.constant 0 : index
    %c0_10 = arith.constant 0 : index
    %7 = vector.load %arg10[%c0_9, %c0_10] : memref<4x512xf32, #tpu.memory_space<vmem>>, vector<4x512xf32>
    tpu.vector_store %arg10[%c0_9, %c0_10], %6 {strides = array<i32>} : memref<4x512xf32, #tpu.memory_space<vmem>>, vector<4x512xf32>,
    %c0_11 = arith.constant 0 : index
    %c128 = arith.constant 128 : index
    %8 = vector.load %arg10[%c0_11, %c128] : memref<4x512xf32, #tpu.memory_space<vmem>>, vector<4x256xf32>
    tpu.vector_store %arg10[%c0_11, %c128], %3 {strides = array<i32>} : memref<4x512xf32, #tpu.memory_space<vmem>>, vector<4x256xf32>,
    %c0_12 = arith.constant 0 : index
    %c111 = arith.constant 111 : index
    %9 = vector.load %arg10[%c0_12, %c111] : memref<4x512xf32, #tpu.memory_space<vmem>>, vector<4x256xf32>
    %10 = vector.broadcast %0 : vector<1x256xf32> to vector<4x256xf32>
    %11 = arith.mulf %9, %10 : vector<4x256xf32>
    %c0_13 = arith.constant 0 : index
    %c0_14 = arith.constant 0 : index
    %12 = vector.load %arg11[%c0_13, %c0_14] : memref<36x256xf32, #tpu.memory_space<vmem>>, vector<4x256xf32>
    tpu.vector_store %arg11[%c0_13, %c0_14], %11 {strides = array<i32>} : memref<36x256xf32, #tpu.memory_space<vmem>>, vector<4x256xf32>,
    %c0_15 = arith.constant 0 : index
    %c112 = arith.constant 112 : index
    %13 = vector.load %arg10[%c0_15, %c112] : memref<4x512xf32, #tpu.memory_space<vmem>>, vector<4x256xf32>
    %c4 = arith.constant 4 : index
    %c0_16 = arith.constant 0 : index
    %14 = vector.load %arg11[%c4, %c0_16] : memref<36x256xf32, #tpu.memory_space<vmem>>, vector<4x256xf32>
    tpu.vector_store %arg11[%c4, %c0_16], %13 {strides = array<i32>} : memref<36x256xf32, #tpu.memory_space<vmem>>, vector<4x256xf32>,
    %c0_17 = arith.constant 0 : index
    %c113 = arith.constant 113 : index
    %15 = vector.load %arg10[%c0_17, %c113] : memref<4x512xf32, #tpu.memory_space<vmem>>, vector<4x256xf32>
    %16 = vector.broadcast %1 : vector<1x256xf32> to vector<4x256xf32>
    %17 = arith.mulf %15, %16 : vector<4x256xf32>
    %c8 = arith.constant 8 : index
    %c0_18 = arith.constant 0 : index
    %18 = vector.load %arg11[%c8, %c0_18] : memref<36x256xf32, #tpu.memory_space<vmem>>, vector<4x256xf32>
    tpu.vector_store %arg11[%c8, %c0_18], %17 {strides = array<i32>} : memref<36x256xf32, #tpu.memory_space<vmem>>, vector<4x256xf32>,
    %c0_19 = arith.constant 0 : index
    %c127 = arith.constant 127 : index
    %19 = vector.load %arg10[%c0_19, %c127] : memref<4x512xf32, #tpu.memory_space<vmem>>, vector<4x256xf32>
    %20 = vector.broadcast %0 : vector<1x256xf32> to vector<4x256xf32>
    %21 = arith.mulf %19, %20 : vector<4x256xf32>
    %c12 = arith.constant 12 : index
    %c0_20 = arith.constant 0 : index
    %22 = vector.load %arg11[%c12, %c0_20] : memref<36x256xf32, #tpu.memory_space<vmem>>, vector<4x256xf32>
    tpu.vector_store %arg11[%c12, %c0_20], %21 {strides = array<i32>} : memref<36x256xf32, #tpu.memory_space<vmem>>, vector<4x256xf32>,
    %c0_21 = arith.constant 0 : index
    %c128_22 = arith.constant 128 : index
    %23 = vector.load %arg10[%c0_21, %c128_22] : memref<4x512xf32, #tpu.memory_space<vmem>>, vector<4x256xf32>
    %c16 = arith.constant 16 : index
    %c0_23 = arith.constant 0 : index
    %24 = vector.load %arg11[%c16, %c0_23] : memref<36x256xf32, #tpu.memory_space<vmem>>, vector<4x256xf32>
    tpu.vector_store %arg11[%c16, %c0_23], %23 {strides = array<i32>} : memref<36x256xf32, #tpu.memory_space<vmem>>, vector<4x256xf32>,
    %c0_24 = arith.constant 0 : index
    %c129 = arith.constant 129 : index
    %25 = vector.load %arg10[%c0_24, %c129] : memref<4x512xf32, #tpu.memory_space<vmem>>, vector<4x256xf32>
    %26 = vector.broadcast %1 : vector<1x256xf32> to vector<4x256xf32>
    %27 = arith.mulf %25, %26 : vector<4x256xf32>
    %c20 = arith.constant 20 : index
    %c0_25 = arith.constant 0 : index
    %28 = vector.load %arg11[%c20, %c0_25] : memref<36x256xf32, #tpu.memory_space<vmem>>, vector<4x256xf32>
    tpu.vector_store %arg11[%c20, %c0_25], %27 {strides = array<i32>} : memref<36x256xf32, #tpu.memory_space<vmem>>, vector<4x256xf32>,
    %c0_26 = arith.constant 0 : index
    %c143 = arith.constant 143 : index
    %29 = vector.load %arg10[%c0_26, %c143] : memref<4x512xf32, #tpu.memory_space<vmem>>, vector<4x256xf32>
    %30 = vector.broadcast %0 : vector<1x256xf32> to vector<4x256xf32>
    %31 = arith.mulf %29, %30 : vector<4x256xf32>
    %c24 = arith.constant 24 : index
    %c0_27 = arith.constant 0 : index
    %32 = vector.load %arg11[%c24, %c0_27] : memref<36x256xf32, #tpu.memory_space<vmem>>, vector<4x256xf32>
    tpu.vector_store %arg11[%c24, %c0_27], %31 {strides = array<i32>} : memref<36x256xf32, #tpu.memory_space<vmem>>, vector<4x256xf32>,
    %c0_28 = arith.constant 0 : index
    %c144 = arith.constant 144 : index
    %33 = vector.load %arg10[%c0_28, %c144] : memref<4x512xf32, #tpu.memory_space<vmem>>, vector<4x256xf32>
    %c28 = arith.constant 28 : index
    %c0_29 = arith.constant 0 : index
    %34 = vector.load %arg11[%c28, %c0_29] : memref<36x256xf32, #tpu.memory_space<vmem>>, vector<4x256xf32>
    tpu.vector_store %arg11[%c28, %c0_29], %33 {strides = array<i32>} : memref<36x256xf32, #tpu.memory_space<vmem>>, vector<4x256xf32>,
    %c0_30 = arith.constant 0 : index
    %c145 = arith.constant 145 : index
    %35 = vector.load %arg10[%c0_30, %c145] : memref<4x512xf32, #tpu.memory_space<vmem>>, vector<4x256xf32>
    %36 = vector.broadcast %1 : vector<1x256xf32> to vector<4x256xf32>
    %37 = arith.mulf %35, %36 : vector<4x256xf32>
    %c32 = arith.constant 32 : index
    %c0_31 = arith.constant 0 : index
    %38 = vector.load %arg11[%c32, %c0_31] : memref<36x256xf32, #tpu.memory_space<vmem>>, vector<4x256xf32>
    tpu.vector_store %arg11[%c32, %c0_31], %37 {strides = array<i32>} : memref<36x256xf32, #tpu.memory_space<vmem>>, vector<4x256xf32>,
    %c0_32 = arith.constant 0 : index
    %c0_33 = arith.constant 0 : index
    %39 = vector.load %arg11[%c0_32, %c0_33] : memref<36x256xf32, #tpu.memory_space<vmem>>, vector<36x256xf32>
    %cst_34 = arith.constant dense<0.000000e+00> : vector<8x256xf32>
    %40 = tpu.matmul %4, %39, %cst_34 {dimension_numbers = #tpu.dot_dimension_numbers<[1], [0], [0], [1], [0, 0, 1, 1], [], []>} : vector<8x36xf32>, vector<36x256xf32>, vector<8x256xf32> -> vector<8x256xf32>
    %41 = vector.broadcast %5 : vector<8x1xf32> to vector<8x256xf32>
    %42 = arith.addf %40, %41 : vector<8x256xf32>
    %cst_35 = arith.constant dense<0.000000e+00> : vector<8xf32>
    %43 = vector.multi_reduction <add>, %42, %cst_35 [1] : vector<8x256xf32> to vector<8xf32>
    %44 = vector.shape_cast %43 : vector<8xf32> to vector<8x1xf32>
    %cst_36 = arith.constant 2.560000e+02 : f32
    %45 = vector.broadcast %cst_36 : f32 to vector<8x1xf32>
    %46 = arith.divf %44, %45 : vector<8x1xf32>
    %47 = arith.mulf %42, %42 : vector<8x256xf32>
    %cst_37 = arith.constant dense<0.000000e+00> : vector<8xf32>
    %48 = vector.multi_reduction <add>, %47, %cst_37 [1] : vector<8x256xf32> to vector<8xf32>
    %49 = vector.shape_cast %48 : vector<8xf32> to vector<8x1xf32>
    %cst_38 = arith.constant 2.560000e+02 : f32
    %50 = vector.broadcast %cst_38 : f32 to vector<8x1xf32>
    %51 = arith.divf %49, %50 : vector<8x1xf32>
    %52 = arith.mulf %46, %46 : vector<8x1xf32>
    %53 = arith.subf %51, %52 : vector<8x1xf32>
    %cst_39 = arith.constant 0.000000e+00 : f32
    %54 = vector.broadcast %cst_39 : f32 to vector<8x1xf32>
    %55 = arith.maximumf %53, %54 : vector<8x1xf32>
    %56 = vector.broadcast %46 : vector<8x1xf32> to vector<8x256xf32>
    %57 = arith.subf %42, %56 : vector<8x256xf32>
    %cst_40 = arith.constant 9.99999974E-6 : f32
    %58 = vector.broadcast %cst_40 : f32 to vector<8x1xf32>
    %59 = arith.addf %55, %58 : vector<8x1xf32>
    %60 = math.rsqrt %59 : vector<8x1xf32>
    %61 = vector.broadcast %60 : vector<8x1xf32> to vector<8x256xf32>
    %62 = arith.mulf %57, %61 : vector<8x256xf32>
    %cst_41 = arith.constant 0.000000e+00 : f32
    %63 = vector.broadcast %cst_41 : f32 to vector<8x256xf32>
    %64 = arith.maximumf %62, %63 : vector<8x256xf32>
    %c0_42 = arith.constant 0 : index
    %c0_43 = arith.constant 0 : index
    %65 = vector.load %arg5[%c0_42, %c0_43] : memref<8x72xf32, #tpu.memory_space<vmem>>, vector<8x72xf32>
    %c0_44 = arith.constant 0 : index
    %c0_45 = arith.constant 0 : index
    %66 = vector.load %arg6[%c0_44, %c0_45] : memref<8x1xf32, #tpu.memory_space<vmem>>, vector<8x1xf32>
    %cst_46 = arith.constant 0.000000e+00 : f32
    %67 = vector.broadcast %cst_46 : f32 to vector<8x512xf32>
    %c0_47 = arith.constant 0 : index
    %c0_48 = arith.constant 0 : index
    %68 = vector.load %arg12[%c0_47, %c0_48] : memref<8x512xf32, #tpu.memory_space<vmem>>, vector<8x512xf32>
    tpu.vector_store %arg12[%c0_47, %c0_48], %67 {strides = array<i32>} : memref<8x512xf32, #tpu.memory_space<vmem>>, vector<8x512xf32>,
    %c0_49 = arith.constant 0 : index
    %c128_50 = arith.constant 128 : index
    %69 = vector.load %arg12[%c0_49, %c128_50] : memref<8x512xf32, #tpu.memory_space<vmem>>, vector<8x256xf32>
    tpu.vector_store %arg12[%c0_49, %c128_50], %64 {strides = array<i32>} : memref<8x512xf32, #tpu.memory_space<vmem>>, vector<8x256xf32>,
    %c0_51 = arith.constant 0 : index
    %c111_52 = arith.constant 111 : index
    %70 = vector.load %arg12[%c0_51, %c111_52] : memref<8x512xf32, #tpu.memory_space<vmem>>, vector<8x256xf32>
    %71 = vector.broadcast %0 : vector<1x256xf32> to vector<8x256xf32>
    %72 = arith.mulf %70, %71 : vector<8x256xf32>
    %c0_53 = arith.constant 0 : index
    %c0_54 = arith.constant 0 : index
    %73 = vector.load %arg13[%c0_53, %c0_54] : memref<72x256xf32, #tpu.memory_space<vmem>>, vector<8x256xf32>
    tpu.vector_store %arg13[%c0_53, %c0_54], %72 {strides = array<i32>} : memref<72x256xf32, #tpu.memory_space<vmem>>, vector<8x256xf32>,
    %c0_55 = arith.constant 0 : index
    %c112_56 = arith.constant 112 : index
    %74 = vector.load %arg12[%c0_55, %c112_56] : memref<8x512xf32, #tpu.memory_space<vmem>>, vector<8x256xf32>
    %c8_57 = arith.constant 8 : index
    %c0_58 = arith.constant 0 : index
    %75 = vector.load %arg13[%c8_57, %c0_58] : memref<72x256xf32, #tpu.memory_space<vmem>>, vector<8x256xf32>
    tpu.vector_store %arg13[%c8_57, %c0_58], %74 {strides = array<i32>} : memref<72x256xf32, #tpu.memory_space<vmem>>, vector<8x256xf32>,
    %c0_59 = arith.constant 0 : index
    %c113_60 = arith.constant 113 : index
    %76 = vector.load %arg12[%c0_59, %c113_60] : memref<8x512xf32, #tpu.memory_space<vmem>>, vector<8x256xf32>
    %77 = vector.broadcast %1 : vector<1x256xf32> to vector<8x256xf32>
    %78 = arith.mulf %76, %77 : vector<8x256xf32>
    %c16_61 = arith.constant 16 : index
    %c0_62 = arith.constant 0 : index
    %79 = vector.load %arg13[%c16_61, %c0_62] : memref<72x256xf32, #tpu.memory_space<vmem>>, vector<8x256xf32>
    tpu.vector_store %arg13[%c16_61, %c0_62], %78 {strides = array<i32>} : memref<72x256xf32, #tpu.memory_space<vmem>>, vector<8x256xf32>,
    %c0_63 = arith.constant 0 : index
    %c127_64 = arith.constant 127 : index
    %80 = vector.load %arg12[%c0_63, %c127_64] : memref<8x512xf32, #tpu.memory_space<vmem>>, vector<8x256xf32>
    %81 = vector.broadcast %0 : vector<1x256xf32> to vector<8x256xf32>
    %82 = arith.mulf %80, %81 : vector<8x256xf32>
    %c24_65 = arith.constant 24 : index
    %c0_66 = arith.constant 0 : index
    %83 = vector.load %arg13[%c24_65, %c0_66] : memref<72x256xf32, #tpu.memory_space<vmem>>, vector<8x256xf32>
    tpu.vector_store %arg13[%c24_65, %c0_66], %82 {strides = array<i32>} : memref<72x256xf32, #tpu.memory_space<vmem>>, vector<8x256xf32>,
    %c0_67 = arith.constant 0 : index
    %c128_68 = arith.constant 128 : index
    %84 = vector.load %arg12[%c0_67, %c128_68] : memref<8x512xf32, #tpu.memory_space<vmem>>, vector<8x256xf32>
    %c32_69 = arith.constant 32 : index
    %c0_70 = arith.constant 0 : index
    %85 = vector.load %arg13[%c32_69, %c0_70] : memref<72x256xf32, #tpu.memory_space<vmem>>, vector<8x256xf32>
    tpu.vector_store %arg13[%c32_69, %c0_70], %84 {strides = array<i32>} : memref<72x256xf32, #tpu.memory_space<vmem>>, vector<8x256xf32>,
    %c0_71 = arith.constant 0 : index
    %c129_72 = arith.constant 129 : index
    %86 = vector.load %arg12[%c0_71, %c129_72] : memref<8x512xf32, #tpu.memory_space<vmem>>, vector<8x256xf32>
    %87 = vector.broadcast %1 : vector<1x256xf32> to vector<8x256xf32>
    %88 = arith.mulf %86, %87 : vector<8x256xf32>
    %c40 = arith.constant 40 : index
    %c0_73 = arith.constant 0 : index
    %89 = vector.load %arg13[%c40, %c0_73] : memref<72x256xf32, #tpu.memory_space<vmem>>, vector<8x256xf32>
    tpu.vector_store %arg13[%c40, %c0_73], %88 {strides = array<i32>} : memref<72x256xf32, #tpu.memory_space<vmem>>, vector<8x256xf32>,
    %c0_74 = arith.constant 0 : index
    %c143_75 = arith.constant 143 : index
    %90 = vector.load %arg12[%c0_74, %c143_75] : memref<8x512xf32, #tpu.memory_space<vmem>>, vector<8x256xf32>
    %91 = vector.broadcast %0 : vector<1x256xf32> to vector<8x256xf32>
    %92 = arith.mulf %90, %91 : vector<8x256xf32>
    %c48 = arith.constant 48 : index
    %c0_76 = arith.constant 0 : index
    %93 = vector.load %arg13[%c48, %c0_76] : memref<72x256xf32, #tpu.memory_space<vmem>>, vector<8x256xf32>
    tpu.vector_store %arg13[%c48, %c0_76], %92 {strides = array<i32>} : memref<72x256xf32, #tpu.memory_space<vmem>>, vector<8x256xf32>,
    %c0_77 = arith.constant 0 : index
    %c144_78 = arith.constant 144 : index
    %94 = vector.load %arg12[%c0_77, %c144_78] : memref<8x512xf32, #tpu.memory_space<vmem>>, vector<8x256xf32>
    %c56 = arith.constant 56 : index
    %c0_79 = arith.constant 0 : index
    %95 = vector.load %arg13[%c56, %c0_79] : memref<72x256xf32, #tpu.memory_space<vmem>>, vector<8x256xf32>
    tpu.vector_store %arg13[%c56, %c0_79], %94 {strides = array<i32>} : memref<72x256xf32, #tpu.memory_space<vmem>>, vector<8x256xf32>,
    %c0_80 = arith.constant 0 : index
    %c145_81 = arith.constant 145 : index
    %96 = vector.load %arg12[%c0_80, %c145_81] : memref<8x512xf32, #tpu.memory_space<vmem>>, vector<8x256xf32>
    %97 = vector.broadcast %1 : vector<1x256xf32> to vector<8x256xf32>
    %98 = arith.mulf %96, %97 : vector<8x256xf32>
    %c64 = arith.constant 64 : index
    %c0_82 = arith.constant 0 : index
    %99 = vector.load %arg13[%c64, %c0_82] : memref<72x256xf32, #tpu.memory_space<vmem>>, vector<8x256xf32>
    tpu.vector_store %arg13[%c64, %c0_82], %98 {strides = array<i32>} : memref<72x256xf32, #tpu.memory_space<vmem>>, vector<8x256xf32>,
    %c0_83 = arith.constant 0 : index
    %c0_84 = arith.constant 0 : index
    %100 = vector.load %arg13[%c0_83, %c0_84] : memref<72x256xf32, #tpu.memory_space<vmem>>, vector<72x256xf32>
    %cst_85 = arith.constant dense<0.000000e+00> : vector<8x256xf32>
    %101 = tpu.matmul %65, %100, %cst_85 {dimension_numbers = #tpu.dot_dimension_numbers<[1], [0], [0], [1], [0, 0, 1, 1], [], []>} : vector<8x72xf32>, vector<72x256xf32>, vector<8x256xf32> -> vector<8x256xf32>
    %102 = vector.broadcast %66 : vector<8x1xf32> to vector<8x256xf32>
    %103 = arith.addf %101, %102 : vector<8x256xf32>
    %cst_86 = arith.constant dense<0.000000e+00> : vector<8xf32>
    %104 = vector.multi_reduction <add>, %103, %cst_86 [1] : vector<8x256xf32> to vector<8xf32>
    %105 = vector.shape_cast %104 : vector<8xf32> to vector<8x1xf32>
    %cst_87 = arith.constant 2.560000e+02 : f32
    %106 = vector.broadcast %cst_87 : f32 to vector<8x1xf32>
    %107 = arith.divf %105, %106 : vector<8x1xf32>
    %108 = arith.mulf %103, %103 : vector<8x256xf32>
    %cst_88 = arith.constant dense<0.000000e+00> : vector<8xf32>
    %109 = vector.multi_reduction <add>, %108, %cst_88 [1] : vector<8x256xf32> to vector<8xf32>
    %110 = vector.shape_cast %109 : vector<8xf32> to vector<8x1xf32>
    %cst_89 = arith.constant 2.560000e+02 : f32
    %111 = vector.broadcast %cst_89 : f32 to vector<8x1xf32>
    %112 = arith.divf %110, %111 : vector<8x1xf32>
    %113 = arith.mulf %107, %107 : vector<8x1xf32>
    %114 = arith.subf %112, %113 : vector<8x1xf32>
    %cst_90 = arith.constant 0.000000e+00 : f32
    %115 = vector.broadcast %cst_90 : f32 to vector<8x1xf32>
    %116 = arith.maximumf %114, %115 : vector<8x1xf32>
    %117 = vector.broadcast %107 : vector<8x1xf32> to vector<8x256xf32>
    %118 = arith.subf %103, %117 : vector<8x256xf32>
    %cst_91 = arith.constant 9.99999974E-6 : f32
    %119 = vector.broadcast %cst_91 : f32 to vector<8x1xf32>
    %120 = arith.addf %116, %119 : vector<8x1xf32>
    %121 = math.rsqrt %120 : vector<8x1xf32>
    %122 = vector.broadcast %121 : vector<8x1xf32> to vector<8x256xf32>
    %123 = arith.mulf %118, %122 : vector<8x256xf32>
    %c0_92 = arith.constant 0 : index
    %c0_93 = arith.constant 0 : index
    %c0_94 = arith.constant 0 : index
    %124 = vector.load %arg7[%c0_92, %c0_93, %c0_94] : memref<1x8x1xf32, #tpu.memory_space<vmem>>, vector<1x8x1xf32>
    %125 = vector.shape_cast %124 : vector<1x8x1xf32> to vector<8x1xf32>
    %126 = vector.broadcast %125 : vector<8x1xf32> to vector<8x256xf32>
    %127 = arith.mulf %126, %123 : vector<8x256xf32>
    %c0_95 = arith.constant 0 : index
    %c0_96 = arith.constant 0 : index
    %c0_97 = arith.constant 0 : index
    %128 = vector.load %arg8[%c0_95, %c0_96, %c0_97] : memref<1x8x1xf32, #tpu.memory_space<vmem>>, vector<1x8x1xf32>
    %129 = vector.shape_cast %128 : vector<1x8x1xf32> to vector<8x1xf32>
    %130 = vector.broadcast %129 : vector<8x1xf32> to vector<8x256xf32>
    %131 = arith.addf %127, %130 : vector<8x256xf32>
    %cst_98 = arith.constant 0.000000e+00 : f32
    %132 = vector.broadcast %cst_98 : f32 to vector<8x256xf32>
    %133 = arith.cmpf oge, %131, %132 : vector<8x256xf32>
    %cst_99 = arith.constant 0.00999999977 : f32
    %134 = vector.broadcast %cst_99 : f32 to vector<8x256xf32>
    %135 = arith.mulf %134, %131 : vector<8x256xf32>
    %136 = arith.select %133, %131, %135 : vector<8x256xi1>, vector<8x256xf32>
    %c0_100 = arith.constant 0 : index
    %c0_101 = arith.constant 0 : index
    %c0_102 = arith.constant 0 : index
    %137 = vector.load %arg9[%c0_100, %c0_101, %c0_102] : memref<1x8x256xf32, #tpu.memory_space<vmem>>, vector<1x8x256xf32>
    %138 = vector.shape_cast %137 : vector<1x8x256xf32> to vector<8x256xf32>
    %139 = vector.shape_cast %136 : vector<8x256xf32> to vector<1x8x256xf32>
    tpu.vector_store %arg9[%c0_100, %c0_101, %c0_102], %139 {strides = array<i32>} : memref<1x8x256xf32, #tpu.memory_space<vmem>>, vector<1x8x256xf32>,
    return
  }
  func.func @transform_0(%arg0: i32) -> (i32, i32, i32) {
    %c0_i32 = arith.constant 0 : i32
    %c0_i32_0 = arith.constant 0 : i32
    %c0_i32_1 = arith.constant 0 : i32
    return %arg0, %c0_i32, %c0_i32_0 : i32, i32, i32
  }
  func.func @transform_1(%arg0: i32) -> (i32, i32) {
    %c0_i32 = arith.constant 0 : i32
    %c0_i32_0 = arith.constant 0 : i32
    %c0_i32_1 = arith.constant 0 : i32
    return %c0_i32, %c0_i32_0 : i32, i32
  }
  func.func @transform_2(%arg0: i32) -> (i32, i32) {
    %c0_i32 = arith.constant 0 : i32
    %c0_i32_0 = arith.constant 0 : i32
    %c0_i32_1 = arith.constant 0 : i32
    return %c0_i32, %c0_i32_0 : i32, i32
  }
  func.func @transform_3(%arg0: i32) -> (i32, i32) {
    %c0_i32 = arith.constant 0 : i32
    %c0_i32_0 = arith.constant 0 : i32
    %c0_i32_1 = arith.constant 0 : i32
    return %c0_i32, %c0_i32_0 : i32, i32
  }
  func.func @transform_4(%arg0: i32) -> (i32, i32) {
    %c0_i32 = arith.constant 0 : i32
    %c0_i32_0 = arith.constant 0 : i32
    %c0_i32_1 = arith.constant 0 : i32
    return %c0_i32, %c0_i32_0 : i32, i32
  }
  func.func @transform_5(%arg0: i32) -> (i32, i32) {
    %c0_i32 = arith.constant 0 : i32
    %c0_i32_0 = arith.constant 0 : i32
    %c0_i32_1 = arith.constant 0 : i32
    return %c0_i32, %c0_i32_0 : i32, i32
  }
  func.func @transform_6(%arg0: i32) -> (i32, i32, i32) {
    %c0_i32 = arith.constant 0 : i32
    %c0_i32_0 = arith.constant 0 : i32
    %c0_i32_1 = arith.constant 0 : i32
    return %arg0, %c0_i32, %c0_i32_0 : i32, i32, i32
  }
  func.func @transform_7(%arg0: i32) -> (i32, i32, i32) {
    %c0_i32 = arith.constant 0 : i32
    %c0_i32_0 = arith.constant 0 : i32
    %c0_i32_1 = arith.constant 0 : i32
    return %arg0, %c0_i32, %c0_i32_0 : i32, i32, i32
  }
  func.func @transform_8(%arg0: i32) -> (i32, i32, i32) {
    %c0_i32 = arith.constant 0 : i32
    %c0_i32_0 = arith.constant 0 : i32
    %c0_i32_1 = arith.constant 0 : i32
    return %arg0, %c0_i32, %c0_i32_0 : i32, i32, i32
  }
}

</mosaic_0001>

<bundles_post_ra>
// kernel: inconv_forward.1
= control target key start
LH: loop header
LB: loop body
LE: loop exit
PB: predicated region body
PF: predicated region fallthrough
CT: control target
= control target key end

     0   :  { %s1280_s27 = smov 0   ;;  %s1521_s0 = inlined_call_operand.vmem [shape: f32[2,4,256], index: 0, kind: input, shape index: {}]   ;;  %s1522_s1 = inlined_call_operand.vmem [shape: f32[2,256], index: 1, kind: input, shape index: {}]   ;;  %s1523_s2 = inlined_call_operand.vmem [shape: f32[8,36], index: 2, kind: input, shape index: {}]   ;;  %s1524_s3 = inlined_call_operand.vmem [shape: f32[8,1], index: 3, kind: input, shape index: {}]   ;;  %s1525_s4 = inlined_call_operand.vmem [shape: f32[8,72], index: 4, kind: input, shape index: {}]   ;;  %s1526_s5 = inlined_call_operand.vmem [shape: f32[8,1], index: 5, kind: input, shape index: {}]   ;;  %s1527_s6 = inlined_call_operand.vmem [shape: f32[2,8,1], index: 6, kind: input, shape index: {}]   ;;  %s1528_s7 = inlined_call_operand.vmem [shape: f32[2,8,1], index: 7, kind: input, shape index: {}]   ;;  %s1529_s8 = inlined_call_operand.vmem [shape: f32[2,8,256], index: 8, kind: output, shape index: {}]  }
   0x1 LB: > { %s1127_s28 = sadd.s32 4294967295, %s1222_s27   ;;  %p1131_p0 = scmp.ge.s32.totalorder %s1222_s27, 1  ;;  %s1222_s27 = sphi %s1280_s27, %s18_s27  }
   0x2   : > { %p280_p1 = scmp.lt.s32.totalorder %s1222_s27, 3 }
   0x4   : > { %p281_p2 = pnand %p1131_p0, %p280_p1 }
   0x5   : > { %s1225_s11 = smov (!%p281_p2), 111   ;;  %s1226_s12 = smov (!%p281_p2), 127  }
   0x6   : > { %284 = sbr.rel (%p281_p2) target bundleno = 1060 (0x424), region = 52  ;;  %s1227_s13 = smov (!%p281_p2), 15  }
   0x7   : > { %s1228_s14 = smov (!%p281_p2), 113   ;;  %s1229_s15 = smov (!%p281_p2), 1  }
   0x8   : > { %s1230_s16 = smov (!%p281_p2), 17   ;;  %p322_p3 = scmp.lt.s32.totalorder (!%p281_p2), %s1127_s28, 1 }
   0x9   : > { %s1231_s21 = smov (!%p281_p2), 112   ;;  %s1232_s22 = smov (!%p281_p2), 16  }
   0xb   : > { %v340_v0 = vld [vmem:[%s1522_s1] ss:$2 sm:$0x3]  ;;  %v1138_v3 = vld [vmem:[%s1522_s1 + $0x1] ss:$2 sm:$0x3] }
   0xc   : > { %v1291_v1 = vperm.slane %v340_v0, 0  ;;  %v1293_v2 = vperm.slane %v340_v0, 1  ;;  %vm355_vm0 = vcmask 1043456   ;;  %v1299_v5 = vperm.slane %v1138_v3, 1  ;;  %s1531_s28 = smov (!%p322_p3, %s1127_s28), 1 }
   0xd   : > { %v1224_v6 = vmov 0.0   ;;  %v1307_v8 = vperm.slane %v1138_v3, 0  ;;  %s1323_s17 = sshll.u32 %s1531_s28, 3  ;;  %vm360_vm1 = vcmask 908288   ;;  %vm421_vm2 = vcmask 924672  }
   0xe   : > { %v354_v4 = vrot.slane %v1293_v2, 4  ;;  %346 = vst [vmem:[#allocation2] sm:$0xff] %v1224_v6  ;;  %v416_v9 = vrot.slane %v1299_v5, 4  ;;  %s326_s20 = scalar_lea.vmem %s1521_s0, %s1323_s17  ;;  %vm453_vm3 = vcmask 1039360   ;;  %vm474_vm4 = vcmask 7168  }
   0xf   : > { %347 = vst [vmem:[#allocation2 + $0x8] sm:$0xff] %v1224_v6  ;;  %v1329_v11 = vld [vmem:[%s326_s20] sm:$0xff]  ;;  %vm441_vm5 = vcmask 121856   ;;  %vm380_vm6 = vcmask 138240   ;;  %vm568_vm7 = vcmask 916480   ;;  %vm404_vm8 = vcmask 130048  }
  0x10   : > { %v356_v7 = vsel %vm355_vm0, %v1291_v1, %v354_v4  ;;  %v417_v10 = vsel %vm355_vm0, %v1307_v8, %v416_v9  ;;  %348 = vst [vmem:[#allocation2 + $0x4] sm:$0xff] %v1329_v11  ;;  %vm620_vm9 = vcmask 293888   ;;  %vm952_vm14 = vcmask 588800  }
  0x11   : > { %357 = vrot.lane.b32.xlu0 %v356_v7, %s1225_s11  ;;  %450 = vrot.lane.b32.xlu1 %v356_v7, %s1226_s12 }
  0x12   : > { %523 = vrot.lane.b32.xlu2 %v356_v7, %s1227_s13 }
  0x16   : > { %v491_v40 = vld [vmem:[#allocation2 + $0xc] sm:$0xf] }
  0x17   : > { %v350_v13 = vld [vmem:[#allocation2 + $0x8] sm:$0xf]  ;;  %v349_v14 = vld [vmem:[#allocation2] sm:$0xff]  ;;  %v522_v47 = vld [vmem:[#allocation2 + $0xc] sm:$0xf] }
  0x18   : > { %v388_v19 = vld [vmem:[#allocation2 + $0x8] sm:$0xf]  ;;  %v552_v57 = vld [vmem:[#allocation2 + $0xc] sm:$0xf] }
  0x19   : > { %418 = vrot.lane.b32.xlu0 %v417_v10, %s1228_s14  ;;  %492 = vrot.lane.b32.xlu1 %v417_v10, %s1229_s15  ;;  %v412_v23 = vld [vmem:[#allocation2 + $0x8] sm:$0xf]  ;;  %v576_v62 = vld [vmem:[#allocation2 + $0xc] sm:$0xf] }
  0x1a   : > { %577 = vrot.lane.b32.xlu2 %v417_v10, %s1230_s16  ;;  %v449_v31 = vld [vmem:[#allocation2 + $0x8] sm:$0xf] }
  0x6c   : > { %v524_v45 = vpop.permute.xlu2 %523 }
  0x6d   : > { %v525_v48 = vrot.slane %v524_v45, 4 }
  0x6f   : > { %v530_v51 = vmul.f32 %v525_v48, %v522_v47  ;;  %v526_v59 = vsel %vm441_vm5, %v525_v48, %v524_v45  ;;  %v1233_v45 = vmov 0  }
  0x70   : > { %v529_v63 = vmul.f32 %v526_v59, %v1329_v11  ;;  %1168 = vset.pattern.permute.xlu0 %v1233_v45  ;;  %1209 = vset.pattern.permute.xlu1 %v1233_v45 }
  0x74   : > { %v578_v58 = vpop.permute.xlu2 %577 }
  0x75   : > { %v579_v61 = vrot.slane %v578_v58, 4 }
  0x77   : > { %v584_v4 = vmul.f32 %v579_v61, %v576_v62 }
  0x83   : > { %v358_v12 = vpop.permute.xlu0 %357  ;;  %v451_v28 = vpop.permute.xlu1 %450 }
  0x84   : > { %v359_v15 = vrot.slane %v358_v12, 4  ;;  %v452_v32 = vrot.slane %v451_v28, 4 }
  0x86   : > { %v361_v16 = vsel %vm360_vm1, %v359_v15, %v358_v12  ;;  %v365_v17 = vmul.f32 %v359_v15, %v350_v13  ;;  %v458_v35 = vmul.f32 %v452_v32, %v449_v31  ;;  %v454_v36 = vsel %vm453_vm3, %v452_v32, %v451_v28 }
  0x87   : > { %v364_v18 = vmul.f32 %v361_v16, %v349_v14  ;;  %v457_v39 = vmul.f32 %v454_v36, %v349_v14  ;;  %v580_v12 = vsel %vm380_vm6, %v579_v61, %v578_v58 }
  0x88   : > { %370 = vst [vmem:[#allocation1 + $0x10] ss:$2 sm:$0xff] %v365_v17 }
  0x89   : > { %368 = vst [vmem:[#allocation1] ss:$2 sm:$0xff] %v364_v18 }
  0x8b   : > { %v419_v20 = vpop.permute.xlu0 %418  ;;  %v493_v37 = vpop.permute.xlu1 %492 }
  0x8c   : > { %v420_v24 = vrot.slane %v419_v20, 4  ;;  %v494_v41 = vrot.slane %v493_v37, 4 }
  0x8e   : > { %v426_v26 = vmul.f32 %v420_v24, %v412_v23  ;;  %v422_v27 = vsel %vm421_vm2, %v420_v24, %v419_v20  ;;  %v499_v44 = vmul.f32 %v494_v41, %v491_v40  ;;  %v495_v52 = vsel %vm474_vm4, %v494_v41, %v493_v37 }
  0x8f   : > { %v373_v21 = vld.sshfl [vmem:[#allocation1 + $0x10] sm:$0xff pattern:$0x75316420]  ;;  %v425_v30 = vmul.f32 %v422_v27, %v349_v14  ;;  %v498_v56 = vmul.f32 %v495_v52, %v1329_v11 }
  0x90   : > { %378 = vrot.lane.b32.xlu2 %v373_v21, %s1230_s16  ;;  %394 = vst [vmem:[#allocation1 + $0x11] ss:$2 sm:$0xff] %v388_v19  ;;  %v372_v22 = vld.sshfl [vmem:[#allocation1 + $0x8] sm:$0xff pattern:$0x75316420] }
  0x91   : > { %376 = vrot.lane.b32.xlu1 %v372_v22, %s1230_s16  ;;  %v371_v25 = vld.sshfl [vmem:[#allocation1] sm:$0xff pattern:$0x75316420] }
  0x92   : > { %374 = vrot.lane.b32.xlu0 %v371_v25, %s1230_s16  ;;  %392 = vst [vmem:[#allocation1 + $0x1] ss:$2 sm:$0xff] %v349_v14  ;;  %v583_v14 = vmul.f32 %v580_v12, %v1329_v11 }
  0x97   : > { %v1337_v29 = vld.sshfl [vmem:[#allocation1 + $0x10] sm:$0xff pattern:$0x75316420] }
  0x98   : > { %431 = vst [vmem:[#allocation1 + $0x10] ss:$2 sm:$0xff] %v426_v26 }
  0x99   : > { %v1339_v33 = vld.sshfl [vmem:[#allocation1] sm:$0xff pattern:$0x75316420]  ;;  %v1341_v34 = vld.sshfl [vmem:[#allocation1 + $0x8] sm:$0xff pattern:$0x75316420] }
  0x9a   : > { %429 = vst [vmem:[#allocation1] ss:$2 sm:$0xff] %v425_v30 }
  0x9f   : > { %v434_v38 = vld.sshfl [vmem:[#allocation1 + $0x10] sm:$0xff pattern:$0x75316420] }
  0xa0   : > { %439 = vrot.lane.b32.xlu2 %v434_v38, %s1227_s13  ;;  %464 = vst [vmem:[#allocation1 + $0x11] ss:$2 sm:$0xff] %v458_v35 }
  0xa1   : > { %v433_v42 = vld.sshfl [vmem:[#allocation1 + $0x8] sm:$0xff pattern:$0x75316420]  ;;  %v432_v43 = vld.sshfl [vmem:[#allocation1] sm:$0xff pattern:$0x75316420] }
  0xa2   : > { %437 = vrot.lane.b32.xlu1 %v433_v42, %s1227_s13  ;;  %435 = vrot.lane.b32.xlu0 %v432_v43, %s1227_s13  ;;  %462 = vst [vmem:[#allocation1 + $0x1] ss:$2 sm:$0xff] %v457_v39 }
  0xa7   : > { %v467_v46 = vld.sshfl [vmem:[#allocation1 + $0x10] sm:$0xff pattern:$0x75316420] }
  0xa8   : > { %472 = vrot.lane.b32.xlu2 %v467_v46, %s1229_s15  ;;  %505 = vst [vmem:[#allocation1 + $0x11] ss:$2 sm:$0xff] %v499_v44  ;;  %v345_v44 = vld [vmem:[%s1524_s3] sm:$0xff] }
  0xa9   : > { %v466_v49 = vld.sshfl [vmem:[#allocation1 + $0x8] sm:$0xff pattern:$0x75316420]  ;;  %v465_v50 = vld.sshfl [vmem:[#allocation1] sm:$0xff pattern:$0x75316420] }
  0xaa   : > { %470 = vrot.lane.b32.xlu1 %v466_v49, %s1229_s15  ;;  %468 = vrot.lane.b32.xlu0 %v465_v50, %s1229_s15  ;;  %483 = vst [vmem:[#allocation1] ss:$2 sm:$0xff] %v1329_v11 }
  0xaf   : > { %v508_v53 = vld.sshfl [vmem:[#allocation1 + $0x10] sm:$0xff pattern:$0x75316420] }
  0xb0   : > { %513 = vrot.lane.b32.xlu2 %v508_v53, %s1226_s12  ;;  %535 = vst [vmem:[#allocation1 + $0x10] ss:$2 sm:$0xff] %v530_v51 }
  0xb1   : > { %v484_v54 = vld.sshfl [vmem:[#allocation1] sm:$0xff pattern:$0x75316420]  ;;  %v485_v55 = vld.sshfl [vmem:[#allocation1 + $0x8] sm:$0xff pattern:$0x75316420] }
  0xb2   : > { %488 = vst [vmem:[#allocation3 + $0x48] sm:$0xf] %v484_v54 }
  0xb3   : > { %489 = vst [vmem:[#allocation3 + $0x28] sm:$0xf] %v485_v55 }
  0xb4   : > { %503 = vst [vmem:[#allocation1 + $0x1] ss:$2 sm:$0xff] %v498_v56 }
  0xb7   : > { %v538_v60 = vld.sshfl [vmem:[#allocation1 + $0x10] sm:$0xff pattern:$0x75316420] }
  0xb8   : > { %543 = vrot.lane.b32.xlu2 %v538_v60, %s1228_s14  ;;  %558 = vst [vmem:[#allocation1 + $0x11] ss:$2 sm:$0xff] %v552_v57 }
  0xbb   : > { %v507_v0 = vld.sshfl [vmem:[#allocation1 + $0x8] sm:$0xff pattern:$0x75316420]  ;;  %v506_v3 = vld.sshfl [vmem:[#allocation1] sm:$0xff pattern:$0x75316420] }
  0xbc   : > { %511 = vrot.lane.b32.xlu1 %v507_v0, %s1226_s12  ;;  %509 = vrot.lane.b32.xlu0 %v506_v3, %s1226_s12  ;;  %533 = vst [vmem:[#allocation1] ss:$2 sm:$0xff] %v529_v63 }
  0xbf   : > { %v561_v7 = vld.sshfl [vmem:[#allocation1 + $0x10] sm:$0xff pattern:$0x75316420] }
  0xc0   : > { %566 = vrot.lane.b32.xlu2 %v561_v7, %s1231_s21  ;;  %589 = vst [vmem:[#allocation1 + $0x10] ss:$2 sm:$0xff] %v584_v4 }
  0xc3   : > { %v537_v9 = vld.sshfl [vmem:[#allocation1 + $0x8] sm:$0xff pattern:$0x75316420]  ;;  %v536_v10 = vld.sshfl [vmem:[#allocation1] sm:$0xff pattern:$0x75316420] }
  0xc4   : > { %541 = vrot.lane.b32.xlu1 %v537_v9, %s1228_s14  ;;  %539 = vrot.lane.b32.xlu0 %v536_v10, %s1228_s14  ;;  %556 = vst [vmem:[#allocation1 + $0x1] ss:$2 sm:$0xff] %v1329_v11  ;;  %v344_v9 = vld [vmem:[%s1523_s2] sm:$0xff] }
  0xc7   : > { %v592_v13 = vld.sshfl [vmem:[#allocation1 + $0x10] sm:$0xff pattern:$0x75316420] }
  0xc8   : > { %597 = vrot.lane.b32.xlu2 %v592_v13, %s1225_s11 }
  0xcb   : > { %v560_v15 = vld.sshfl [vmem:[#allocation1 + $0x8] sm:$0xff pattern:$0x75316420]  ;;  %v559_v16 = vld.sshfl [vmem:[#allocation1] sm:$0xff pattern:$0x75316420] }
  0xcc   : > { %564 = vrot.lane.b32.xlu1 %v560_v15, %s1231_s21  ;;  %562 = vrot.lane.b32.xlu0 %v559_v16, %s1231_s21  ;;  %587 = vst [vmem:[#allocation1] ss:$2 sm:$0xff] %v583_v14 }
  0xd0   : > { %402 = vrot.lane.b32.xlu2 %v1337_v29, %s1232_s22 }
  0xd3   : > { %v591_v17 = vld.sshfl [vmem:[#allocation1 + $0x8] sm:$0xff pattern:$0x75316420]  ;;  %v590_v18 = vld.sshfl [vmem:[#allocation1] sm:$0xff pattern:$0x75316420] }
  0xd4   : > { %595 = vrot.lane.b32.xlu1 %v591_v17, %s1225_s11  ;;  %593 = vrot.lane.b32.xlu0 %v590_v18, %s1225_s11 }
  0xd8   : > { %827 = vrot.lane.b32.xlu2 %v1307_v8, %s1229_s15 }
  0xdc   : > { %400 = vrot.lane.b32.xlu1 %v1341_v34, %s1232_s22  ;;  %398 = vrot.lane.b32.xlu0 %v1339_v33, %s1232_s22 }
  0xe4   : > { %617 = vperm.xlu0 %1168, %v345_v44  }
  0xea   : > { %v379_v11 = vpop.permute.xlu2 %378 }
  0xec   : > { %903 = vrot.lane.b32.xlu0 %v1307_v8, %s1230_s16 }
  0xf4   : > { %905 = vrot.lane.b32.xlu0 %v1299_v5, %s1230_s16 }
  0xfa   : > { %v440_v23 = vpop.permute.xlu2 %439 }
  0xfc   : > { %856 = vrot.lane.b32.xlu0 %v1291_v1, %s1227_s13 }
 0x102   : > { %v473_v28 = vpop.permute.xlu2 %472 }
 0x103   : > { %v377_v19 = vpop.permute.xlu1 %376 }
 0x104   : > { %v382_v20 = vsel %vm380_vm6, %v377_v19, %v379_v11  ;;  %v375_v21 = vpop.permute.xlu0 %374  ;;  %858 = vrot.lane.b32.xlu0 %v1293_v2, %s1227_s13 }
 0x105   : > { %386 = vst [vmem:[#allocation3] sm:$0xf] %v382_v20  ;;  %v381_v22 = vsel %vm380_vm6, %v375_v21, %v377_v19 }
 0x106   : > { %385 = vst [vmem:[#allocation3 + $0x30] sm:$0xf] %v381_v22 }
 0x10a   : > { %v514_v33 = vpop.permute.xlu2 %513 }
 0x10c   : > { %794 = vrot.lane.b32.xlu0 %v1291_v1, %s1226_s12 }
 0x112   : > { %v544_v36 = vpop.permute.xlu2 %543 }
 0x114   : > { %v438_v24 = vpop.permute.xlu1 %437  ;;  %v436_v25 = vpop.permute.xlu0 %435  ;;  %796 = vrot.lane.b32.xlu0 %v1293_v2, %s1226_s12 }
 0x115   : > { %v443_v26 = vsel %vm441_vm5, %v438_v24, %v440_v23  ;;  %v442_v27 = vsel %vm441_vm5, %v436_v25, %v438_v24  ;;  %v1234_v25 = vmov 256.0  }
 0x116   : > { %447 = vst [vmem:[#allocation3 + $0x10] sm:$0xf] %v443_v26  ;;  %1210 = vrcp.f32 %v1234_v25 }
 0x117   : > { %446 = vst [vmem:[#allocation3 + $0x18] sm:$0xf] %v442_v27 }
 0x11a   : > { %v567_v43 = vpop.permute.xlu2 %566 }
 0x11c   : > { %v471_v29 = vpop.permute.xlu1 %470  ;;  %v469_v30 = vpop.permute.xlu0 %468  ;;  %765 = vrot.lane.b32.xlu0 %v1307_v8, %s1228_s14 }
 0x11d   : > { %v476_v31 = vsel %vm474_vm4, %v471_v29, %v473_v28  ;;  %v475_v32 = vsel %vm474_vm4, %v469_v30, %v471_v29  ;;  %v1211_v26 = vpop.eup %1210 }
 0x11e   : > { %480 = vst [vmem:[#allocation3 + $0x10] sm:$0xf0] %v476_v31  ;;  %v674_v27 = vmul.f32 256.0, %v1211_v26  ;;  %vm678_vm10 = vweird.f32 %v1211_v26 }
 0x11f   : > { %479 = vst [vmem:[#allocation3 + $0x18] sm:$0xf0] %v475_v32 }
 0x120   : > { %v675_v28 = vsub.f32 1.0, %v674_v27 }
 0x122   : > { %v598_v50 = vpop.permute.xlu2 %597  ;;  %v676_v29 = vmul.f32 %v1211_v26, %v675_v28 }
 0x124   : > { %720 = vrot.lane.b32.xlu0 %v1293_v2, %s1225_s11 }
 0x125   : > { %v608_v4 = vld [vmem:[#allocation3 + $0x10] sm:$0xff] }
 0x126   : > { %v607_v7 = vld [vmem:[#allocation3 + $0x18] sm:$0xff] }
 0x12a   : > { %v403_v55 = vpop.permute.xlu2 %402 }
 0x12e   : > { %v512_v34 = vpop.permute.xlu1 %511  ;;  %v510_v35 = vpop.permute.xlu0 %509 }
 0x12f   : > { %v516_v37 = vsel %vm453_vm3, %v512_v34, %v514_v33  ;;  %v515_v38 = vsel %vm453_vm3, %v510_v35, %v512_v34 }
 0x130   : > { %520 = vst [vmem:[#allocation3 + $0x28] sm:$0xf0] %v516_v37 }
 0x131   : > { %519 = vst [vmem:[#allocation3 + $0x48] sm:$0xf0] %v515_v38 }
 0x132   : > { %v828_v30 = vpop.permute.xlu2 %827 }
 0x136   : > { %v542_v39 = vpop.permute.xlu1 %541  ;;  %v540_v40 = vpop.permute.xlu0 %539 }
 0x137   : > { %v546_v41 = vsel %vm421_vm2, %v542_v39, %v544_v36  ;;  %v545_v42 = vsel %vm421_vm2, %v540_v40, %v542_v39  ;;  %v610_v0 = vld [vmem:[#allocation3 + $0x28] sm:$0xff] }
 0x138   : > { %550 = vst [vmem:[#allocation3 + $0x20] sm:$0xf] %v546_v41  ;;  %v609_v3 = vld [vmem:[#allocation3 + $0x48] sm:$0xff] }
 0x139   : > { %549 = vst [vmem:[#allocation3 + $0x8] sm:$0xf] %v545_v42 }
 0x13e   : > { %v565_v46 = vpop.permute.xlu1 %564  ;;  %v563_v47 = vpop.permute.xlu0 %562 }
 0x13f   : > { %v570_v48 = vsel %vm568_vm7, %v565_v46, %v567_v43  ;;  %v569_v49 = vsel %vm568_vm7, %v563_v47, %v565_v46 }
 0x140   : > { %574 = vst [vmem:[#allocation3 + $0x20] sm:$0xf0] %v570_v48 }
 0x141   : > { %573 = vst [vmem:[#allocation3 + $0x8] sm:$0xf0] %v569_v49 }
 0x146   : > { %v596_v51 = vpop.permute.xlu1 %595  ;;  %v594_v52 = vpop.permute.xlu0 %593 }
 0x147   : > { %v600_v53 = vsel %vm360_vm1, %v596_v51, %v598_v50  ;;  %v599_v54 = vsel %vm360_vm1, %v594_v52, %v596_v51  ;;  %v612_v62 = vld [vmem:[#allocation3 + $0x20] sm:$0xff] }
 0x148   : > { %604 = vst [vmem:[#allocation3 + $0x38] sm:$0xf] %v600_v53  ;;  %v611_v63 = vld [vmem:[#allocation3 + $0x8] sm:$0xff] }
 0x149   : > { %603 = vst [vmem:[#allocation3 + $0x40] sm:$0xf] %v599_v54 }
 0x14e   : > { %v401_v56 = vpop.permute.xlu1 %400  ;;  %v399_v57 = vpop.permute.xlu0 %398 }
 0x14f   : > { %v406_v58 = vsel %vm404_vm8, %v401_v56, %v403_v55  ;;  %v405_v59 = vsel %vm404_vm8, %v399_v57, %v401_v56  ;;  %v614_v60 = vld [vmem:[#allocation3 + $0x38] sm:$0xf] }
 0x150   : > { %410 = vst [vmem:[#allocation3] sm:$0xf0] %v406_v58  ;;  %v613_v61 = vld [vmem:[#allocation3 + $0x40] sm:$0xf]  ;;  %1141 = vmatpush.msk.msra.mxu1 %vm355_vm0, %v614_v60 }
 0x151   : > { %409 = vst [vmem:[#allocation3 + $0x30] sm:$0xf0] %v405_v59  ;;  %1139 = vmatpush.msk.msra.mxu0 %vm355_vm0, %v613_v61 }
 0x152   : > { %662 = vmatpush.msra.mxu1 %v612_v62 }
 0x153   : > { %642 = vmatpush.msra.mxu0 %v611_v63 }
 0x154   : > { %663 = vmatpush.msra.mxu1 %v610_v0 }
 0x155   : > { %643 = vmatpush.msra.mxu0 %v609_v3 }
 0x156   : > { %664 = vmatpush.msra.mxu1 %v608_v4  ;;  %v618_v13 = vpop.permute.xlu0 %617 }
 0x157   : > { %644 = vmatpush.msra.mxu0 %v607_v7  ;;  %v606_v10 = vld [vmem:[#allocation3] sm:$0xff] }
 0x158   : > { %v605_v12 = vld [vmem:[#allocation3 + $0x30] sm:$0xff]  ;;  %665 = vmatpush.msra.mxu1 %v606_v10 }
 0x159   : > { %645 = vmatpush.msra.mxu0 %v605_v12  ;;  %1142 = vmatmul.msk.f32.vlgmr.msra.gmra.mxu1 %vm620_vm9, %v344_v9 }
 0x15a   : > { %1140 = vmatmul.msk.f32.vlgmr.msra.gmra.mxu0 %vm620_vm9, %v344_v9 }
 0x15e   : > { %v1418_v21 = vpop.permute.xlu0 %903 }
 0x166   : > { %v906_v22 = vpop.permute.xlu0 %905 }
 0x167   : > { %v913_v24 = vmul.f32 0.0, %v906_v22  ;;  %v907_v62 = vsel %vm380_vm6, %v1418_v21, %v906_v22 }
 0x16e   : > { %v857_v23 = vpop.permute.xlu0 %856 }
 0x176   : > { %v859_v8 = vpop.permute.xlu0 %858 }
 0x177   : > { %v866_v2 = vmul.f32 0.0, %v859_v8  ;;  %v860_v56 = vsel %vm441_vm5, %v857_v23, %v859_v8 }
 0x179   : > { %874 = vrot.lane.b32.xlu0 %v866_v2, %s1228_s14 }
 0x17e   : > { %v795_v41 = vpop.permute.xlu0 %794 }
 0x17f   : > { %v802_v10 = vmul.f32 0.0, %v795_v41 }
 0x186   : > { %v797_v51 = vpop.permute.xlu0 %796 }
 0x187   : > { %v798_v63 = vsel %vm453_vm3, %v795_v41, %v797_v51 }
 0x18e   : > { %v766_v0 = vpop.permute.xlu0 %765 }
 0x18f   : > { %v773_v12 = vmul.f32 0.0, %v766_v0 }
 0x1d6   : > { %v667_v14 = vpop.f32.mrf.mxu1 }
 0x1d7   : > { %v668_v15 = vadd.f32 %v667_v14, %v618_v13  ;;  %v647_v16 = vpop.f32.mrf.mxu0 }
 0x1d8   : > { %v648_v17 = vadd.f32 %v647_v16, %v618_v13 }
 0x1d9   : > { %v682_v18 = vmul.f32 %v668_v15, %v668_v15 }
 0x1da   : > { %v670_v11 = vadd.f32 %v668_v15, %v648_v17  ;;  %v681_v19 = vmul.f32 %v648_v17, %v648_v17 }
 0x1dc   : > { %671 = vadd.xlane.f32.xlu1 %v670_v11  ;;  %v683_v20 = vadd.f32 %v682_v18, %v681_v19  ;;  %v721_v19 = vpop.permute.xlu0 %720 }
 0x1de   : > { %684 = vadd.xlane.f32.xlu2 %v683_v20 }
 0x1f5   : > { %829 = vrot.lane.b32.xlu1 %v1299_v5, %s1229_s15 }
 0x1f6   : > { %767 = vrot.lane.b32.xlu2 %v1299_v5, %s1228_s14  ;;  %v677_v5 = vadd.f32 %v1211_v26, %v676_v29 }
 0x1f8   : > { %v1430_v31 = vsel %vm678_vm10, %v1211_v26, %v677_v5 }
 0x1fd   : > { %718 = vrot.lane.b32.xlu1 %v1291_v1, %s1225_s11 }
 0x1fe   : > { %892 = vrot.lane.b32.xlu2 %v1224_v6, %s1231_s21 }
 0x205   : > { %921 = vrot.lane.b32.xlu1 %v913_v24, %s1225_s11 }
 0x24f   : > { %v672_v32 = vpop.xlane.xlu1 %671 }
 0x250   : > { %v680_v1 = vmul.f32 %v1430_v31, %v672_v32 }
 0x251   : > { %v685_v33 = vpop.xlane.xlu2 %684 }
 0x252   : > { %v686_v34 = vmul.f32 %v685_v33, %v1430_v31  ;;  %v687_v35 = vmul.f32 %v680_v1, %v680_v1  ;;  %v690_v48 = vsub.f32 %v648_v17, %v680_v1  ;;  %v691_v49 = vsub.f32 %v668_v15, %v680_v1 }
 0x254   : > { %v688_v36 = vsub.f32 %v686_v34, %v687_v35  ;;  %v875_v34 = vpop.permute.xlu0 %874 }
 0x256   : > { %v689_v37 = vmax.f32 %v688_v36, 0.0  ;;  %v708_v36 = vld [vmem:[%s1526_s5] sm:$0xff] }
 0x258   : > { %v692_v38 = vadd.f32 1e-05, %v689_v37 }
 0x259   : > { %v768_v60 = vpop.permute.xlu2 %767 }
 0x25a   : > { %1212 = vrsqrt.f32 %v692_v38  ;;  %vm699_vm12 = vweird.f32 %v692_v38  ;;  %v769_v4 = vsel %vm421_vm2, %v766_v0, %v768_v60 }
 0x260   : > { %v1213_v39 = vpop.eup %1212 }
 0x261   : > { %v694_v40 = vmul.f32 %v1213_v39, %v692_v38  ;;  %vm700_vm11 = vweird.f32 %v1213_v39  ;;  %v893_v27 = vpop.permute.xlu2 %892 }
 0x262   : > { %vm701_vm13 = vmor %vm699_vm12, %vm700_vm11 }
 0x263   : > { %v695_v42 = vmul.f32 %v1213_v39, %v694_v40 }
 0x265   : > { %v696_v43 = vmul.f32 0.5, %v695_v42 }
 0x267   : > { %v697_v44 = vsub.f32 1.5, %v696_v43  ;;  %v830_v45 = vpop.permute.xlu1 %829 }
 0x268   : > { %v837_v46 = vmul.f32 0.0, %v830_v45  ;;  %v831_v16 = vsel %vm474_vm4, %v828_v30, %v830_v45 }
 0x269   : > { %v698_v47 = vmul.f32 %v1213_v39, %v697_v44 }
 0x26a   : > { %845 = vrot.lane.b32.xlu1 %v837_v46, %s1226_s12 }
 0x26b   : > { %v702_v50 = vsel %vm701_vm13, %v1213_v39, %v698_v47 }
 0x26c   : > { %v703_v52 = vmul.f32 %v702_v50, %v690_v48  ;;  %v704_v53 = vmul.f32 %v702_v50, %v691_v49 }
 0x26e   : > { %v1435_v54 = vmax.f32 %v703_v52, 0.0  ;;  %v1437_v55 = vmax.f32 %v704_v53, 0.0 }
 0x26f   : > { %v719_v20 = vpop.permute.xlu1 %718 }
 0x270   : > { %v1174_v57 = vpack.i.bf16 %v1435_v54, %v1224_v6  ;;  %v1169_v58 = vpack.i.bf16 %v1437_v55, %v1435_v54  ;;  %v864_v59 = vmul.f32 %v857_v23, %v1435_v54  ;;  %v865_v61 = vmul.f32 %v860_v56, %v1437_v55 }
 0x271   : > { %v803_v6 = vmul.f32 %v798_v63, %v1435_v54  ;;  %v911_v7 = vmul.f32 %v1418_v21, %v1435_v54  ;;  %v912_v9 = vmul.f32 %v907_v62, %v1437_v55  ;;  %v774_v13 = vmul.f32 %v769_v4, %v1435_v54 }
 0x272   : > { %1175 = vrot.lane.b32.xlu2 %v1174_v57, %s1232_s22  ;;  %1170 = vrot.lane.b32.xlu0 %v1169_v58, %s1231_s21  ;;  %v1184_v3 = vpack.i.bf16 %v865_v61, %v864_v59  ;;  %v836_v18 = vmul.f32 %v831_v16, %v1437_v55  ;;  %v835_v11 = vmul.f32 %v828_v30, %v1435_v54  ;;  %v726_v8 = vmul.f32 0.0, %v719_v20  ;;  %v707_v16 = vld [vmem:[%s1525_s4] sm:$0xff] }
 0x273   : > { %v1179_v14 = vpack.i.bf16 %v912_v9, %v911_v7  ;;  %v1194_v15 = vpack.i.bf16 %v803_v6, %v802_v10  ;;  %v1199_v17 = vpack.i.bf16 %v774_v13, %v773_v12  ;;  %v775_v21 = vmul.f32 %v768_v60, %v1437_v55 }
 0x274   : > { %1185 = vrot.lane.b32.xlu1 %v1184_v3, %s1228_s14  ;;  %v1189_v22 = vpack.i.bf16 %v836_v18, %v835_v11  ;;  %v722_v23 = vsel %vm360_vm1, %v719_v20, %v721_v19  ;;  %v804_v24 = vmul.f32 %v797_v51, %v1437_v55  ;;  %v728_v26 = vmul.f32 %v721_v19, %v1437_v55  ;;  %s334_s14 = scalar_lea.vmem %s1528_s7, %s1323_s17 }
 0x275   : > { %v727_v2 = vmul.f32 %v722_v23, %v1435_v54  ;;  %v1032_v62 = vld [vmem:[%s334_s14] sm:$0xff] }
 0x277   : > { %v1204_v25 = vpack.i.bf16 %v727_v2, %v726_v8  ;;  %v922_v30 = vpop.permute.xlu1 %921 }
 0x27a   : > { %1180 = vrot.lane.b32.xlu2 %v1179_v14, %s1225_s11  ;;  %1195 = vrot.lane.b32.xlu0 %v1194_v15, %s1229_s15  ;;  %s330_s11 = scalar_lea.vmem %s1527_s6, %s1323_s17  ;;  %s1148_s17 = sshll.u32 %s1531_s28, 4 }
 0x27b   : > { %v1024_v44 = vld [vmem:[%s330_s11] sm:$0xff]  ;;  %s339_s20 = scalar_lea.vmem %s1529_s8, %s1148_s17 }
 0x27c   : > { %1200 = vrot.lane.b32.xlu1 %v1199_v17, %s1227_s13 }
 0x282   : > { %783 = vrot.lane.b32.xlu0 %v775_v21, %s1227_s13  ;;  %1190 = vrot.lane.b32.xlu2 %v1189_v22, %s1226_s12 }
 0x284   : > { %754 = vrot.lane.b32.xlu1 %v1437_v55, %s1232_s22 }
 0x28a   : > { %812 = vrot.lane.b32.xlu2 %v804_v24, %s1229_s15  ;;  %1205 = vrot.lane.b32.xlu0 %v1204_v25, %s1230_s16 }
 0x28c   : > { %949 = vperm.xlu1 %1209, %v708_v36  }
 0x292   : > { %736 = vrot.lane.b32.xlu2 %v728_v26, %s1230_s16 }
 0x294   : > { %1027 = vperm.xlu1 %1209, %v1024_v44  }
 0x29c   : > { %1035 = vperm.xlu1 %1209, %v1032_v62  }
 0x2cc   : > { %v1476_v28 = vpop.permute.xlu2 %1175 }
 0x2cd   : > { %v1178_v63 = vunpack.i.h.bf16 %v1476_v28  ;;  %v1177_v0 = vunpack.i.l.bf16 %v1476_v28 }
 0x2d4   : > { %v1181_v29 = vpop.permute.xlu2 %1180 }
 0x2d5   : > { %v1183_v5 = vunpack.i.h.bf16 %v1181_v29  ;;  %v1182_v32 = vunpack.i.l.bf16 %v1181_v29 }
 0x2d7   : > { %v923_v1 = vsel %vm360_vm1, %v1182_v32, %v1183_v5  ;;  %v924_v33 = vsel %vm360_vm1, %v1183_v5, %v922_v30 }
 0x2d8   : > { %963 = vmatpush.msra.mxu2 %v923_v1  ;;  %983 = vmatpush.msra.mxu3 %v924_v33 }
 0x2dc   : > { %v846_v35 = vpop.permute.xlu1 %845  ;;  %v1191_v37 = vpop.permute.xlu2 %1190 }
 0x2dd   : > { %v1193_v45 = vunpack.i.h.bf16 %v1191_v37  ;;  %v1192_v46 = vunpack.i.l.bf16 %v1191_v37 }
 0x2df   : > { %v847_v52 = vsel %vm453_vm3, %v1192_v46, %v1193_v45  ;;  %v848_v53 = vsel %vm453_vm3, %v1193_v45, %v846_v35 }
 0x2e4   : > { %v1171_v38 = vpop.permute.xlu0 %1170  ;;  %v813_v58 = vpop.permute.xlu2 %812 }
 0x2e5   : > { %v1173_v39 = vunpack.i.h.bf16 %v1171_v38  ;;  %v1172_v40 = vunpack.i.l.bf16 %v1171_v38 }
 0x2e6   : > { %v1186_v41 = vpop.permute.xlu1 %1185 }
 0x2e7   : > { %v894_v42 = vsel %vm568_vm7, %v1172_v40, %v1173_v39  ;;  %v895_v43 = vsel %vm568_vm7, %v1173_v39, %v893_v27  ;;  %v1188_v47 = vunpack.i.h.bf16 %v1186_v41  ;;  %v1187_v48 = vunpack.i.l.bf16 %v1186_v41 }
 0x2e8   : > { %964 = vmatpush.msra.mxu2 %v894_v42  ;;  %984 = vmatpush.msra.mxu3 %v895_v43 }
 0x2e9   : > { %v876_v49 = vsel %vm421_vm2, %v1187_v48, %v1188_v47  ;;  %v877_v50 = vsel %vm421_vm2, %v1188_v47, %v875_v34 }
 0x2ea   : > { %965 = vmatpush.msra.mxu2 %v876_v49  ;;  %985 = vmatpush.msra.mxu3 %v877_v50 }
 0x2ec   : > { %v1196_v51 = vpop.permute.xlu0 %1195  ;;  %966 = vmatpush.msra.mxu2 %v847_v52  ;;  %986 = vmatpush.msra.mxu3 %v848_v53  ;;  %v737_v15 = vpop.permute.xlu2 %736 }
 0x2ed   : > { %v1198_v56 = vunpack.i.h.bf16 %v1196_v51  ;;  %v1197_v57 = vunpack.i.l.bf16 %v1196_v51 }
 0x2ee   : > { %v1201_v59 = vpop.permute.xlu1 %1200  ;;  %967 = vmatpush.msra.mxu2 %v1435_v54  ;;  %987 = vmatpush.msra.mxu3 %v1437_v55  ;;  %v756_v55 = vsel %vm404_vm8, %v1177_v0, %v1178_v63 }
 0x2ef   : > { %v814_v60 = vsel %vm474_vm4, %v1197_v57, %v1198_v56  ;;  %v815_v61 = vsel %vm474_vm4, %v1198_v56, %v813_v58  ;;  %v1203_v3 = vunpack.i.h.bf16 %v1201_v59  ;;  %v1202_v6 = vunpack.i.l.bf16 %v1201_v59 }
 0x2f0   : > { %968 = vmatpush.msra.mxu2 %v814_v60  ;;  %988 = vmatpush.msra.mxu3 %v815_v61 }
 0x2f1   : > { %v785_v4 = vsel %vm441_vm5, %v1202_v6, %v1203_v3 }
 0x2f2   : > { %969 = vmatpush.msra.mxu2 %v785_v4 }
 0x2f4   : > { %v784_v54 = vpop.permute.xlu0 %783  ;;  %970 = vmatpush.msra.mxu2 %v756_v55 }
 0x2f5   : > { %v786_v7 = vsel %vm441_vm5, %v1203_v3, %v784_v54 }
 0x2f6   : > { %989 = vmatpush.msra.mxu3 %v786_v7  ;;  %v755_v9 = vpop.permute.xlu1 %754 }
 0x2f7   : > { %v757_v10 = vsel %vm404_vm8, %v1178_v63, %v755_v9 }
 0x2f8   : > { %990 = vmatpush.msra.mxu3 %v757_v10 }
 0x2fc   : > { %v1206_v12 = vpop.permute.xlu0 %1205 }
 0x2fd   : > { %v1208_v13 = vunpack.i.h.bf16 %v1206_v12  ;;  %v1207_v14 = vunpack.i.l.bf16 %v1206_v12 }
 0x2fe   : > { %v950_v11 = vpop.permute.xlu1 %949 }
 0x2ff   : > { %v738_v17 = vsel %vm380_vm6, %v1207_v14, %v1208_v13  ;;  %v739_v18 = vsel %vm380_vm6, %v1208_v13, %v737_v15 }
 0x300   : > { %971 = vmatpush.msra.mxu2 %v738_v17  ;;  %991 = vmatpush.msra.mxu3 %v739_v18 }
 0x301   : > { %1143 = vmatmul.msk.f32.vlgmr.msra.gmra.mxu2 %vm952_vm14, %v707_v16  ;;  %1144 = vmatmul.msk.f32.vlgmr.msra.gmra.mxu3 %vm952_vm14, %v707_v16 }
 0x306   : > { %v1028_v35 = vpop.permute.xlu1 %1027 }
 0x30e   : > { %v1036_v45 = vpop.permute.xlu1 %1035 }
 0x384   : > { %v973_v19 = vpop.f32.mrf.mxu2  ;;  %v993_v20 = vpop.f32.mrf.mxu3 }
 0x385   : > { %v974_v21 = vadd.f32 %v973_v19, %v950_v11  ;;  %v994_v22 = vadd.f32 %v993_v20, %v950_v11 }
 0x387   : > { %v996_v23 = vadd.f32 %v994_v22, %v974_v21  ;;  %v1000_v8 = vmul.f32 %v974_v21, %v974_v21  ;;  %v1001_v2 = vmul.f32 %v994_v22, %v994_v22 }
 0x389   : > { %997 = vadd.xlane.f32.xlu0 %v996_v23  ;;  %v1002_v24 = vadd.f32 %v1001_v2, %v1000_v8 }
 0x38b   : > { %1003 = vadd.xlane.f32.xlu2 %v1002_v24 }
 0x3fc   : > { %v998_v25 = vpop.xlane.xlu0 %997 }
 0x3fd   : > { %v999_v26 = vmul.f32 %v998_v25, %v1430_v31 }
 0x3fe   : > { %v1004_v27 = vpop.xlane.xlu2 %1003 }
 0x3ff   : > { %v1005_v28 = vmul.f32 %v1004_v27, %v1430_v31  ;;  %v1006_v29 = vmul.f32 %v999_v26, %v999_v26  ;;  %v1009_v39 = vsub.f32 %v974_v21, %v999_v26  ;;  %v1010_v40 = vsub.f32 %v994_v22, %v999_v26 }
 0x401   : > { %v1007_v30 = vsub.f32 %v1005_v28, %v1006_v29 }
 0x403   : > { %v1008_v5 = vmax.f32 %v1007_v30, 0.0 }
 0x405   : > { %v1011_v32 = vadd.f32 1e-05, %v1008_v5 }
 0x407   : > { %1214 = vrsqrt.f32 %v1011_v32  ;;  %vm1018_vm0 = vweird.f32 %v1011_v32 }
 0x40d   : > { %v1215_v1 = vpop.eup %1214 }
 0x40e   : > { %v1013_v33 = vmul.f32 %v1215_v1, %v1011_v32  ;;  %vm1019_vm15 = vweird.f32 %v1215_v1 }
 0x40f   : > { %vm1020_vm1 = vmor %vm1018_vm0, %vm1019_vm15 }
 0x410   : > { %v1014_v34 = vmul.f32 %v1215_v1, %v1013_v33 }
 0x412   : > { %v1015_v36 = vmul.f32 0.5, %v1014_v34 }
 0x414   : > { %v1016_v37 = vsub.f32 1.5, %v1015_v36 }
 0x416   : > { %v1017_v38 = vmul.f32 %v1215_v1, %v1016_v37 }
 0x418   : > { %v1021_v41 = vsel %vm1020_vm1, %v1215_v1, %v1017_v38 }
 0x419   : > { %v1022_v31 = vmul.f32 %v1021_v41, %v1009_v39  ;;  %v1023_v42 = vmul.f32 %v1021_v41, %v1010_v40 }
 0x41b   : > { %v1030_v43 = vmul.f32 %v1028_v35, %v1022_v31  ;;  %v1031_v44 = vmul.f32 %v1028_v35, %v1023_v42 }
 0x41d   : > { %v1038_v46 = vadd.f32 %v1036_v45, %v1030_v43  ;;  %v1039_v47 = vadd.f32 %v1036_v45, %v1031_v44 }
 0x41f   : > { %vm1040_vm2 = vcmp.ge.f32.partialorder %v1038_v46, 0.0  ;;  %vm1041_vm3 = vcmp.ge.f32.partialorder %v1039_v47, 0.0  ;;  %v1042_v48 = vmul.f32 0.01, %v1038_v46  ;;  %v1043_v49 = vmul.f32 0.01, %v1039_v47 }
 0x421   : > { %v1044_v50 = vsel %vm1040_vm2, %v1038_v46, %v1042_v48  ;;  %v1045_v51 = vsel %vm1041_vm3, %v1039_v47, %v1043_v49 }
 0x422   : > { %1046 = vst [vmem:[%s339_s20] sm:$0xff] %v1044_v50 }
 0x423   : > { %1047 = vst [vmem:[%s339_s20 + $0x8] sm:$0xff] %v1045_v51 }
 0x424 PF: > { %s18_s27 = sadd.s32 1, %s1222_s27  }
 0x425   : > { %p15_p4 = scmp.ge.s32.totalorder %s18_s27, 4  }
 0x427   :  { %17 = sbr.rel (!%p15_p4) target bundleno = 1 (0x1), region = 101 }

</bundles_post_ra>
